<compile_context>
chip_gen: v6e
topology: v6e:2x2x1
jax: 0.10.0
libtpu: 0.0.40
codegen_flags: <defaults>
</compile_context>

<pallas_src>
import functools
import math

import jax
import jax.numpy as jnp
import numpy as np
from jax import lax
from jax.experimental import pallas as pl
from jax.experimental.pallas import tpu as pltpu


def _cross_attn_kernel(x_ref, c_ref, bias_ref, wqT_ref, wkT_ref, wvT_ref, wpT_ref, bp_ref,
                       o_ref, acc_ref, *, num_heads, head_dim, scale):
    mxu_dtype = jnp.bfloat16

    x = x_ref[0]          # (TN, C)  bf16
    c = c_ref[0]          # (L, C)   bf16
    bias = bias_ref[0]    # (1, L)   f32 additive mask (0 keep / -1e30 masked)

    # Projections: bf16 operands, f32 accumulation, single cast for the attention matmuls.
    # NOTE: k/v are recomputed per query tile; for very large N/TN they could be hoisted to a
    # per-batch scratch, kept simple here since the query-tile axis is "parallel".
    q = jnp.dot(x, wqT_ref[...], preferred_element_type=jnp.float32).astype(mxu_dtype)  # (TN, C)
    k = jnp.dot(c, wkT_ref[...], preferred_element_type=jnp.float32).astype(mxu_dtype)  # (L, C)
    v = jnp.dot(c, wvT_ref[...], preferred_element_type=jnp.float32).astype(mxu_dtype)  # (L, C)

    acc_ref[...] = jnp.zeros_like(acc_ref)

    for h in range(num_heads):   # static unroll; only acc_ref survives an iteration
        lo = h * head_dim
        hi = lo + head_dim
        qh = q[:, lo:hi]         # (TN, D) bf16
        kh = k[:, lo:hi]         # (L, D)  bf16
        vh = v[:, lo:hi]         # (L, D)  bf16

        # scores = qh @ kh^T : contract the head dim of both operands, no explicit transpose.
        s = lax.dot_general(qh, kh, (((1,), (1,)), ((), ())),
                            preferred_element_type=jnp.float32)         # (TN, L) f32
        s = s * scale + bias                                             # additive mask

        m = jnp.max(s, axis=-1, keepdims=True)
        p = jnp.exp(s - m)
        denom = jnp.sum(p, axis=-1, keepdims=True)
        attn = p * pl.reciprocal(denom, approx=True)                     # softmax over L

        head_out = jnp.dot(attn.astype(mxu_dtype), vh,
                           preferred_element_type=jnp.float32)           # (TN, D) f32

        # Fold the output projection per head: slice WprojT on the contraction (sublane) dim.
        acc_ref[...] += jnp.dot(head_out.astype(mxu_dtype), wpT_ref[lo:hi, :],
                                preferred_element_type=jnp.float32)      # (TN, C)

    o_ref[0] = (acc_ref[...] + bp_ref[...]).astype(o_ref.dtype)


def cross_attention_pallas(x, c, mask, wq, wkv, wp, bp, *, num_heads, tile_n=None):
    """x: (B,N,C) f32, c: (B,L,C) f32, mask: (B,L) bool,
    wq: (C,C), wkv: (2C,C), wp: (C,C) in torch (out,in) orientation, bp: (C,)."""
    B, N, C = x.shape
    L = c.shape[1]
    assert C % num_heads == 0
    head_dim = C // num_heads
    scale = head_dim ** (-0.5)

    # Query-tile size: multiple of 8 dividing N (or the whole N).
    if tile_n is None:
        tile_n = N
        for cand in (128, 64, 32, 16, 8):
            if N % cand == 0:
                tile_n = cand
                break
    assert N % tile_n == 0
    n_tiles = N // tile_n

    mxu_dtype = jnp.bfloat16
    # Pre-transpose + split weights so the kernel does plain a @ W; cast to bf16 once on host.
    wqT = wq.T.astype(mxu_dtype)                  # (C, C)
    wkT = wkv[:C, :].T.astype(mxu_dtype)          # (C, C)
    wvT = wkv[C:, :].T.astype(mxu_dtype)          # (C, C)
    wpT = wp.T.astype(mxu_dtype)                  # (C, C)
    bp2 = bp.reshape(1, C).astype(jnp.float32)    # (1, C)

    # Additive mask bias: 0.0 keep / -1e30 masked (no -inf -> NaN hazard).
    bias = jnp.where(mask, 0.0, -1e30).astype(jnp.float32).reshape(B, 1, L)

    x_bf = x.astype(mxu_dtype)   # halves HBM->VMEM traffic for activations
    c_bf = c.astype(mxu_dtype)

    kernel = functools.partial(
        _cross_attn_kernel,
        num_heads=num_heads, head_dim=head_dim, scale=scale,
    )

    # VMEM budget (weights are grid-invariant but double-buffered by the default pipeline).
    # TODO(synk): at production C (>=1024) give the weight BlockSpecs pipeline_mode=pl.Buffered(1)
    # or memory_space=pl.ANY + a single manual DMA so they are not double-buffered (v7x: 64 MiB).
    est_vmem = (
        2 * (4 * C * C * 2)                    # 4 bf16 weight blocks, double-buffered
        + 2 * 2 * (tile_n * C + L * C)         # x/c tiles (bf16), double-buffered
        + 2 * 4 * (L + tile_n * C + C)         # mask bias, out tile, proj bias (f32)
        + 4 * tile_n * C                       # f32 accumulator scratch
        + (4 << 20)                            # headroom for in-kernel intermediates
    )
    vmem_limit = int(min(max(est_vmem, 32 << 20), 64 << 20))

    grid_spec = pltpu.PrefetchScalarGridSpec(
        num_scalar_prefetch=0,
        grid=(B, n_tiles),
        in_specs=[
            pl.BlockSpec((1, tile_n, C), lambda b, n: (b, n, 0)),   # x  (per batch, query tile)
            pl.BlockSpec((1, L, C), lambda b, n: (b, 0, 0)),        # c  (per batch)
            pl.BlockSpec((1, 1, L), lambda b, n: (b, 0, 0)),        # additive mask bias
            pl.BlockSpec((C, C), lambda b, n: (0, 0)),              # Wq^T
            pl.BlockSpec((C, C), lambda b, n: (0, 0)),              # Wk^T
            pl.BlockSpec((C, C), lambda b, n: (0, 0)),              # Wv^T
            pl.BlockSpec((C, C), lambda b, n: (0, 0)),              # Wproj^T
            pl.BlockSpec((1, C), lambda b, n: (0, 0)),              # proj bias
        ],
        out_specs=pl.BlockSpec((1, tile_n, C), lambda b, n: (b, n, 0)),
        scratch_shapes=[pltpu.VMEM((tile_n, C), jnp.float32)],
    )

    return pl.pallas_call(
        kernel,
        out_shape=jax.ShapeDtypeStruct((B, N, C), x.dtype),
        grid_spec=grid_spec,
        compiler_params=pltpu.CompilerParams(
            dimension_semantics=("parallel", "parallel"),
            vmem_limit_bytes=vmem_limit,
        ),
    )(x_bf, c_bf, bias, wqT, wkT, wvT, wpT, bp2)


def cross_attention_ref(x, c, mask, wq, wkv, wp, bp, *, num_heads):
    """Pure-JAX f32 reference mirroring the PyTorch forward exactly."""
    B, N, C = x.shape
    L = c.shape[1]
    D = C // num_heads
    q = x @ wq.T                                              # (B, N, C)
    kv = c @ wkv.T                                            # (B, L, 2C)
    k, v = kv[..., :C], kv[..., C:]
    q = q.reshape(B, N, num_heads, D).transpose(0, 2, 1, 3)   # (B, H, N, D)
    k = k.reshape(B, L, num_heads, D).transpose(0, 2, 1, 3)   # (B, H, L, D)
    v = v.reshape(B, L, num_heads, D).transpose(0, 2, 1, 3)   # (B, H, L, D)
    s = jnp.einsum('bhnd,bhld->bhnl', q, k) * (D ** (-0.5))
    s = jnp.where(mask[:, None, None, :], s, -jnp.inf)
    p = jax.nn.softmax(s, axis=-1)
    o = jnp.einsum('bhnl,bhld->bhnd', p, v)
    o = o.transpose(0, 2, 1, 3).reshape(B, N, C)
    return o @ wp.T + bp


if __name__ == "__main__":
    # Small deterministic config
    B, N, L = 2, 16, 8
    dim, num_heads = 32, 4

    key = jax.random.PRNGKey(0)
    kx, kc, kq, kkv, kp, kb, km = jax.random.split(key, 7)

    x = jax.random.normal(kx, (B, N, dim), dtype=jnp.float32)
    c = jax.random.normal(kc, (B, L, dim), dtype=jnp.float32)

    # Parameter init (deterministic, torch Linear-like uniform(-1/sqrt(in), 1/sqrt(in)))
    bound = 1.0 / math.sqrt(dim)
    wq = jax.random.uniform(kq, (dim, dim), minval=-bound, maxval=bound, dtype=jnp.float32)
    wkv = jax.random.uniform(kkv, (2 * dim, dim), minval=-bound, maxval=bound, dtype=jnp.float32)
    wp = jax.random.uniform(kp, (dim, dim), minval=-bound, maxval=bound, dtype=jnp.float32)
    bp = jax.random.uniform(kb, (dim,), minval=-bound, maxval=bound, dtype=jnp.float32)

    # Boolean mask (B, L): True = keep. Ensure no fully-masked row (matches module usage).
    mask = jax.random.bernoulli(km, p=0.7, shape=(B, L))
    mask = mask.at[:, 0].set(True)

    out = cross_attention_pallas(x, c, mask, wq, wkv, wp, bp, num_heads=num_heads)
    out = jax.block_until_ready(out)

    ref = cross_attention_ref(x, c, mask, wq, wkv, wp, bp, num_heads=num_heads)
    # bf16 MXU operands (with f32 accumulation) + approx EUP reciprocal -> tolerance relaxed
    # from 1e-5 to 2e-2 vs the pure-f32 reference.
    np.testing.assert_allclose(np.asarray(out), np.asarray(ref), rtol=2e-2, atol=2e-2)

    print("KERNEL_OK")
</pallas_src>

<mosaic_0001>
module attributes {stable_mosaic.version = 11 : i64} {
  func.func @_cross_attn_kernel(%arg0: i32, %arg1: i32, %arg2: memref<1x16x32xbf16, #tpu.memory_space<vmem>>, %arg3: memref<1x8x32xbf16, #tpu.memory_space<vmem>>, %arg4: memref<1x1x8xf32, #tpu.memory_space<vmem>>, %arg5: memref<32x32xbf16, #tpu.memory_space<vmem>>, %arg6: memref<32x32xbf16, #tpu.memory_space<vmem>>, %arg7: memref<32x32xbf16, #tpu.memory_space<vmem>>, %arg8: memref<32x32xbf16, #tpu.memory_space<vmem>>, %arg9: memref<1x32xf32, #tpu.memory_space<vmem>>, %arg10: memref<1x16x32xf32, #tpu.memory_space<vmem>>, %arg11: memref<16x32xf32, #tpu.memory_space<vmem>>) attributes {dimension_semantics = [#tpu.dimension_semantics<parallel>, #tpu.dimension_semantics<parallel>], iteration_bounds = array<i64: 2, 1>, scalar_prefetch = 0 : i64, scratch_operands = 1 : i64, tpu.core_type = #tpu.core_type<tc>, window_params = [{transform_indices = @transform_0, window_bounds = array<i64: 1, 16, 32>}, {transform_indices = @transform_1, window_bounds = array<i64: 1, 8, 32>}, {transform_indices = @transform_2, window_bounds = array<i64: 1, 1, 8>}, {pipeline_mode = #tpu.pipeline_mode<synchronous>, transform_indices = @transform_3, window_bounds = array<i64: 32, 32>}, {pipeline_mode = #tpu.pipeline_mode<synchronous>, transform_indices = @transform_4, window_bounds = array<i64: 32, 32>}, {pipeline_mode = #tpu.pipeline_mode<synchronous>, transform_indices = @transform_5, window_bounds = array<i64: 32, 32>}, {pipeline_mode = #tpu.pipeline_mode<synchronous>, transform_indices = @transform_6, window_bounds = array<i64: 32, 32>}, {pipeline_mode = #tpu.pipeline_mode<synchronous>, transform_indices = @transform_7, window_bounds = array<i64: 1, 32>}, {transform_indices = @transform_8, window_bounds = array<i64: 1, 16, 32>}]} {
    %c0 = arith.constant 0 : index
    %c0_0 = arith.constant 0 : index
    %c0_1 = arith.constant 0 : index
    %0 = vector.load %arg2[%c0, %c0_0, %c0_1] : memref<1x16x32xbf16, #tpu.memory_space<vmem>>, vector<1x16x32xbf16>
    %1 = vector.shape_cast %0 : vector<1x16x32xbf16> to vector<16x32xbf16>
    %c0_2 = arith.constant 0 : index
    %c0_3 = arith.constant 0 : index
    %c0_4 = arith.constant 0 : index
    %2 = vector.load %arg3[%c0_2, %c0_3, %c0_4] : memref<1x8x32xbf16, #tpu.memory_space<vmem>>, vector<1x8x32xbf16>
    %3 = vector.shape_cast %2 : vector<1x8x32xbf16> to vector<8x32xbf16>
    %c0_5 = arith.constant 0 : index
    %c0_6 = arith.constant 0 : index
    %c0_7 = arith.constant 0 : index
    %4 = vector.load %arg4[%c0_5, %c0_6, %c0_7] : memref<1x1x8xf32, #tpu.memory_space<vmem>>, vector<1x1x8xf32>
    %5 = vector.shape_cast %4 : vector<1x1x8xf32> to vector<1x8xf32>
    %c0_8 = arith.constant 0 : index
    %c0_9 = arith.constant 0 : index
    %6 = vector.load %arg5[%c0_8, %c0_9] : memref<32x32xbf16, #tpu.memory_space<vmem>>, vector<32x32xbf16>
    %cst = arith.constant dense<0.000000e+00> : vector<16x32xf32>
    %7 = tpu.matmul %1, %6, %cst {dimension_numbers = #tpu.dot_dimension_numbers<[1], [0], [0], [1], [0, 0, 1, 1], [], []>} : vector<16x32xbf16>, vector<32x32xbf16>, vector<16x32xf32> -> vector<16x32xf32>
    %8 = arith.truncf %7 : vector<16x32xf32> to vector<16x32xbf16>
    %c0_10 = arith.constant 0 : index
    %c0_11 = arith.constant 0 : index
    %9 = vector.load %arg6[%c0_10, %c0_11] : memref<32x32xbf16, #tpu.memory_space<vmem>>, vector<32x32xbf16>
    %cst_12 = arith.constant dense<0.000000e+00> : vector<8x32xf32>
    %10 = tpu.matmul %3, %9, %cst_12 {dimension_numbers = #tpu.dot_dimension_numbers<[1], [0], [0], [1], [0, 0, 1, 1], [], []>} : vector<8x32xbf16>, vector<32x32xbf16>, vector<8x32xf32> -> vector<8x32xf32>
    %11 = arith.truncf %10 : vector<8x32xf32> to vector<8x32xbf16>
    %c0_13 = arith.constant 0 : index
    %c0_14 = arith.constant 0 : index
    %12 = vector.load %arg7[%c0_13, %c0_14] : memref<32x32xbf16, #tpu.memory_space<vmem>>, vector<32x32xbf16>
    %cst_15 = arith.constant dense<0.000000e+00> : vector<8x32xf32>
    %13 = tpu.matmul %3, %12, %cst_15 {dimension_numbers = #tpu.dot_dimension_numbers<[1], [0], [0], [1], [0, 0, 1, 1], [], []>} : vector<8x32xbf16>, vector<32x32xbf16>, vector<8x32xf32> -> vector<8x32xf32>
    %14 = arith.truncf %13 : vector<8x32xf32> to vector<8x32xbf16>
    %cst_16 = arith.constant 0.000000e+00 : f32
    %15 = vector.broadcast %cst_16 : f32 to vector<16x32xf32>
    %c0_17 = arith.constant 0 : index
    %c0_18 = arith.constant 0 : index
    %16 = vector.load %arg11[%c0_17, %c0_18] : memref<16x32xf32, #tpu.memory_space<vmem>>, vector<16x32xf32>
    tpu.vector_store %arg11[%c0_17, %c0_18], %15 {strides = array<i32>} : memref<16x32xf32, #tpu.memory_space<vmem>>, vector<16x32xf32>,
    %17 = vector.extract_strided_slice %8 {offsets = [0, 0], sizes = [16, 8], strides = [1, 1]} : vector<16x32xbf16> to vector<16x8xbf16>
    %18 = vector.extract_strided_slice %11 {offsets = [0, 0], sizes = [8, 8], strides = [1, 1]} : vector<8x32xbf16> to vector<8x8xbf16>
    %19 = vector.extract_strided_slice %14 {offsets = [0, 0], sizes = [8, 8], strides = [1, 1]} : vector<8x32xbf16> to vector<8x8xbf16>
    %cst_19 = arith.constant dense<0.000000e+00> : vector<16x8xf32>
    %20 = tpu.matmul %17, %18, %cst_19 {dimension_numbers = #tpu.dot_dimension_numbers<[1], [1], [0], [0], [0, 0, 1, 0], [], []>} : vector<16x8xbf16>, vector<8x8xbf16>, vector<16x8xf32> -> vector<16x8xf32>
    %cst_20 = arith.constant 0.353553385 : f32
    %21 = vector.broadcast %cst_20 : f32 to vector<16x8xf32>
    %22 = arith.mulf %20, %21 : vector<16x8xf32>
    %23 = vector.broadcast %5 : vector<1x8xf32> to vector<16x8xf32>
    %24 = arith.addf %22, %23 : vector<16x8xf32>
    %cst_21 = arith.constant dense<0xFF800000> : vector<16xf32>
    %25 = vector.multi_reduction <maximumf>, %24, %cst_21 [1] : vector<16x8xf32> to vector<16xf32>
    %26 = vector.shape_cast %25 : vector<16xf32> to vector<16x1xf32>
    %27 = vector.broadcast %26 : vector<16x1xf32> to vector<16x8xf32>
    %28 = arith.subf %24, %27 : vector<16x8xf32>
    %29 = math.exp %28 : vector<16x8xf32>
    %cst_22 = arith.constant dense<0.000000e+00> : vector<16xf32>
    %30 = vector.multi_reduction <add>, %29, %cst_22 [1] : vector<16x8xf32> to vector<16xf32>
    %31 = vector.shape_cast %30 : vector<16xf32> to vector<16x1xf32>
    %32 = tpu.reciprocal %31 {approx = true} : vector<16x1xf32> -> vector<16x1xf32>
    %33 = vector.broadcast %32 : vector<16x1xf32> to vector<16x8xf32>
    %34 = arith.mulf %29, %33 : vector<16x8xf32>
    %35 = arith.truncf %34 : vector<16x8xf32> to vector<16x8xbf16>
    %cst_23 = arith.constant dense<0.000000e+00> : vector<16x8xf32>
    %36 = tpu.matmul %35, %19, %cst_23 {dimension_numbers = #tpu.dot_dimension_numbers<[1], [0], [0], [1], [0, 0, 1, 1], [], []>} : vector<16x8xbf16>, vector<8x8xbf16>, vector<16x8xf32> -> vector<16x8xf32>
    %c0_24 = arith.constant 0 : index
    %c0_25 = arith.constant 0 : index
    %37 = vector.load %arg11[%c0_24, %c0_25] : memref<16x32xf32, #tpu.memory_space<vmem>>, vector<16x32xf32>
    %38 = arith.truncf %36 : vector<16x8xf32> to vector<16x8xbf16>
    %c0_26 = arith.constant 0 : index
    %c0_27 = arith.constant 0 : index
    %39 = vector.load %arg8[%c0_26, %c0_27] : memref<32x32xbf16, #tpu.memory_space<vmem>>, vector<8x32xbf16>
    %cst_28 = arith.constant dense<0.000000e+00> : vector<16x32xf32>
    %40 = tpu.matmul %38, %39, %cst_28 {dimension_numbers = #tpu.dot_dimension_numbers<[1], [0], [0], [1], [0, 0, 1, 1], [], []>} : vector<16x8xbf16>, vector<8x32xbf16>, vector<16x32xf32> -> vector<16x32xf32>
    %41 = arith.addf %37, %40 : vector<16x32xf32>
    %c0_29 = arith.constant 0 : index
    %c0_30 = arith.constant 0 : index
    %42 = vector.load %arg11[%c0_29, %c0_30] : memref<16x32xf32, #tpu.memory_space<vmem>>, vector<16x32xf32>
    tpu.vector_store %arg11[%c0_29, %c0_30], %41 {strides = array<i32>} : memref<16x32xf32, #tpu.memory_space<vmem>>, vector<16x32xf32>,
    %43 = vector.extract_strided_slice %8 {offsets = [0, 8], sizes = [16, 8], strides = [1, 1]} : vector<16x32xbf16> to vector<16x8xbf16>
    %44 = vector.extract_strided_slice %11 {offsets = [0, 8], sizes = [8, 8], strides = [1, 1]} : vector<8x32xbf16> to vector<8x8xbf16>
    %45 = vector.extract_strided_slice %14 {offsets = [0, 8], sizes = [8, 8], strides = [1, 1]} : vector<8x32xbf16> to vector<8x8xbf16>
    %cst_31 = arith.constant dense<0.000000e+00> : vector<16x8xf32>
    %46 = tpu.matmul %43, %44, %cst_31 {dimension_numbers = #tpu.dot_dimension_numbers<[1], [1], [0], [0], [0, 0, 1, 0], [], []>} : vector<16x8xbf16>, vector<8x8xbf16>, vector<16x8xf32> -> vector<16x8xf32>
    %cst_32 = arith.constant 0.353553385 : f32
    %47 = vector.broadcast %cst_32 : f32 to vector<16x8xf32>
    %48 = arith.mulf %46, %47 : vector<16x8xf32>
    %49 = vector.broadcast %5 : vector<1x8xf32> to vector<16x8xf32>
    %50 = arith.addf %48, %49 : vector<16x8xf32>
    %cst_33 = arith.constant dense<0xFF800000> : vector<16xf32>
    %51 = vector.multi_reduction <maximumf>, %50, %cst_33 [1] : vector<16x8xf32> to vector<16xf32>
    %52 = vector.shape_cast %51 : vector<16xf32> to vector<16x1xf32>
    %53 = vector.broadcast %52 : vector<16x1xf32> to vector<16x8xf32>
    %54 = arith.subf %50, %53 : vector<16x8xf32>
    %55 = math.exp %54 : vector<16x8xf32>
    %cst_34 = arith.constant dense<0.000000e+00> : vector<16xf32>
    %56 = vector.multi_reduction <add>, %55, %cst_34 [1] : vector<16x8xf32> to vector<16xf32>
    %57 = vector.shape_cast %56 : vector<16xf32> to vector<16x1xf32>
    %58 = tpu.reciprocal %57 {approx = true} : vector<16x1xf32> -> vector<16x1xf32>
    %59 = vector.broadcast %58 : vector<16x1xf32> to vector<16x8xf32>
    %60 = arith.mulf %55, %59 : vector<16x8xf32>
    %61 = arith.truncf %60 : vector<16x8xf32> to vector<16x8xbf16>
    %cst_35 = arith.constant dense<0.000000e+00> : vector<16x8xf32>
    %62 = tpu.matmul %61, %45, %cst_35 {dimension_numbers = #tpu.dot_dimension_numbers<[1], [0], [0], [1], [0, 0, 1, 1], [], []>} : vector<16x8xbf16>, vector<8x8xbf16>, vector<16x8xf32> -> vector<16x8xf32>
    %c0_36 = arith.constant 0 : index
    %c0_37 = arith.constant 0 : index
    %63 = vector.load %arg11[%c0_36, %c0_37] : memref<16x32xf32, #tpu.memory_space<vmem>>, vector<16x32xf32>
    %64 = arith.truncf %62 : vector<16x8xf32> to vector<16x8xbf16>
    %c8 = arith.constant 8 : index
    %c0_38 = arith.constant 0 : index
    %65 = vector.load %arg8[%c8, %c0_38] : memref<32x32xbf16, #tpu.memory_space<vmem>>, vector<8x32xbf16>
    %cst_39 = arith.constant dense<0.000000e+00> : vector<16x32xf32>
    %66 = tpu.matmul %64, %65, %cst_39 {dimension_numbers = #tpu.dot_dimension_numbers<[1], [0], [0], [1], [0, 0, 1, 1], [], []>} : vector<16x8xbf16>, vector<8x32xbf16>, vector<16x32xf32> -> vector<16x32xf32>
    %67 = arith.addf %63, %66 : vector<16x32xf32>
    %c0_40 = arith.constant 0 : index
    %c0_41 = arith.constant 0 : index
    %68 = vector.load %arg11[%c0_40, %c0_41] : memref<16x32xf32, #tpu.memory_space<vmem>>, vector<16x32xf32>
    tpu.vector_store %arg11[%c0_40, %c0_41], %67 {strides = array<i32>} : memref<16x32xf32, #tpu.memory_space<vmem>>, vector<16x32xf32>,
    %69 = vector.extract_strided_slice %8 {offsets = [0, 16], sizes = [16, 8], strides = [1, 1]} : vector<16x32xbf16> to vector<16x8xbf16>
    %70 = vector.extract_strided_slice %11 {offsets = [0, 16], sizes = [8, 8], strides = [1, 1]} : vector<8x32xbf16> to vector<8x8xbf16>
    %71 = vector.extract_strided_slice %14 {offsets = [0, 16], sizes = [8, 8], strides = [1, 1]} : vector<8x32xbf16> to vector<8x8xbf16>
    %cst_42 = arith.constant dense<0.000000e+00> : vector<16x8xf32>
    %72 = tpu.matmul %69, %70, %cst_42 {dimension_numbers = #tpu.dot_dimension_numbers<[1], [1], [0], [0], [0, 0, 1, 0], [], []>} : vector<16x8xbf16>, vector<8x8xbf16>, vector<16x8xf32> -> vector<16x8xf32>
    %cst_43 = arith.constant 0.353553385 : f32
    %73 = vector.broadcast %cst_43 : f32 to vector<16x8xf32>
    %74 = arith.mulf %72, %73 : vector<16x8xf32>
    %75 = vector.broadcast %5 : vector<1x8xf32> to vector<16x8xf32>
    %76 = arith.addf %74, %75 : vector<16x8xf32>
    %cst_44 = arith.constant dense<0xFF800000> : vector<16xf32>
    %77 = vector.multi_reduction <maximumf>, %76, %cst_44 [1] : vector<16x8xf32> to vector<16xf32>
    %78 = vector.shape_cast %77 : vector<16xf32> to vector<16x1xf32>
    %79 = vector.broadcast %78 : vector<16x1xf32> to vector<16x8xf32>
    %80 = arith.subf %76, %79 : vector<16x8xf32>
    %81 = math.exp %80 : vector<16x8xf32>
    %cst_45 = arith.constant dense<0.000000e+00> : vector<16xf32>
    %82 = vector.multi_reduction <add>, %81, %cst_45 [1] : vector<16x8xf32> to vector<16xf32>
    %83 = vector.shape_cast %82 : vector<16xf32> to vector<16x1xf32>
    %84 = tpu.reciprocal %83 {approx = true} : vector<16x1xf32> -> vector<16x1xf32>
    %85 = vector.broadcast %84 : vector<16x1xf32> to vector<16x8xf32>
    %86 = arith.mulf %81, %85 : vector<16x8xf32>
    %87 = arith.truncf %86 : vector<16x8xf32> to vector<16x8xbf16>
    %cst_46 = arith.constant dense<0.000000e+00> : vector<16x8xf32>
    %88 = tpu.matmul %87, %71, %cst_46 {dimension_numbers = #tpu.dot_dimension_numbers<[1], [0], [0], [1], [0, 0, 1, 1], [], []>} : vector<16x8xbf16>, vector<8x8xbf16>, vector<16x8xf32> -> vector<16x8xf32>
    %c0_47 = arith.constant 0 : index
    %c0_48 = arith.constant 0 : index
    %89 = vector.load %arg11[%c0_47, %c0_48] : memref<16x32xf32, #tpu.memory_space<vmem>>, vector<16x32xf32>
    %90 = arith.truncf %88 : vector<16x8xf32> to vector<16x8xbf16>
    %c16 = arith.constant 16 : index
    %c0_49 = arith.constant 0 : index
    %91 = vector.load %arg8[%c16, %c0_49] : memref<32x32xbf16, #tpu.memory_space<vmem>>, vector<8x32xbf16>
    %cst_50 = arith.constant dense<0.000000e+00> : vector<16x32xf32>
    %92 = tpu.matmul %90, %91, %cst_50 {dimension_numbers = #tpu.dot_dimension_numbers<[1], [0], [0], [1], [0, 0, 1, 1], [], []>} : vector<16x8xbf16>, vector<8x32xbf16>, vector<16x32xf32> -> vector<16x32xf32>
    %93 = arith.addf %89, %92 : vector<16x32xf32>
    %c0_51 = arith.constant 0 : index
    %c0_52 = arith.constant 0 : index
    %94 = vector.load %arg11[%c0_51, %c0_52] : memref<16x32xf32, #tpu.memory_space<vmem>>, vector<16x32xf32>
    tpu.vector_store %arg11[%c0_51, %c0_52], %93 {strides = array<i32>} : memref<16x32xf32, #tpu.memory_space<vmem>>, vector<16x32xf32>,
    %95 = vector.extract_strided_slice %8 {offsets = [0, 24], sizes = [16, 8], strides = [1, 1]} : vector<16x32xbf16> to vector<16x8xbf16>
    %96 = vector.extract_strided_slice %11 {offsets = [0, 24], sizes = [8, 8], strides = [1, 1]} : vector<8x32xbf16> to vector<8x8xbf16>
    %97 = vector.extract_strided_slice %14 {offsets = [0, 24], sizes = [8, 8], strides = [1, 1]} : vector<8x32xbf16> to vector<8x8xbf16>
    %cst_53 = arith.constant dense<0.000000e+00> : vector<16x8xf32>
    %98 = tpu.matmul %95, %96, %cst_53 {dimension_numbers = #tpu.dot_dimension_numbers<[1], [1], [0], [0], [0, 0, 1, 0], [], []>} : vector<16x8xbf16>, vector<8x8xbf16>, vector<16x8xf32> -> vector<16x8xf32>
    %cst_54 = arith.constant 0.353553385 : f32
    %99 = vector.broadcast %cst_54 : f32 to vector<16x8xf32>
    %100 = arith.mulf %98, %99 : vector<16x8xf32>
    %101 = vector.broadcast %5 : vector<1x8xf32> to vector<16x8xf32>
    %102 = arith.addf %100, %101 : vector<16x8xf32>
    %cst_55 = arith.constant dense<0xFF800000> : vector<16xf32>
    %103 = vector.multi_reduction <maximumf>, %102, %cst_55 [1] : vector<16x8xf32> to vector<16xf32>
    %104 = vector.shape_cast %103 : vector<16xf32> to vector<16x1xf32>
    %105 = vector.broadcast %104 : vector<16x1xf32> to vector<16x8xf32>
    %106 = arith.subf %102, %105 : vector<16x8xf32>
    %107 = math.exp %106 : vector<16x8xf32>
    %cst_56 = arith.constant dense<0.000000e+00> : vector<16xf32>
    %108 = vector.multi_reduction <add>, %107, %cst_56 [1] : vector<16x8xf32> to vector<16xf32>
    %109 = vector.shape_cast %108 : vector<16xf32> to vector<16x1xf32>
    %110 = tpu.reciprocal %109 {approx = true} : vector<16x1xf32> -> vector<16x1xf32>
    %111 = vector.broadcast %110 : vector<16x1xf32> to vector<16x8xf32>
    %112 = arith.mulf %107, %111 : vector<16x8xf32>
    %113 = arith.truncf %112 : vector<16x8xf32> to vector<16x8xbf16>
    %cst_57 = arith.constant dense<0.000000e+00> : vector<16x8xf32>
    %114 = tpu.matmul %113, %97, %cst_57 {dimension_numbers = #tpu.dot_dimension_numbers<[1], [0], [0], [1], [0, 0, 1, 1], [], []>} : vector<16x8xbf16>, vector<8x8xbf16>, vector<16x8xf32> -> vector<16x8xf32>
    %c0_58 = arith.constant 0 : index
    %c0_59 = arith.constant 0 : index
    %115 = vector.load %arg11[%c0_58, %c0_59] : memref<16x32xf32, #tpu.memory_space<vmem>>, vector<16x32xf32>
    %116 = arith.truncf %114 : vector<16x8xf32> to vector<16x8xbf16>
    %c24 = arith.constant 24 : index
    %c0_60 = arith.constant 0 : index
    %117 = vector.load %arg8[%c24, %c0_60] : memref<32x32xbf16, #tpu.memory_space<vmem>>, vector<8x32xbf16>
    %cst_61 = arith.constant dense<0.000000e+00> : vector<16x32xf32>
    %118 = tpu.matmul %116, %117, %cst_61 {dimension_numbers = #tpu.dot_dimension_numbers<[1], [0], [0], [1], [0, 0, 1, 1], [], []>} : vector<16x8xbf16>, vector<8x32xbf16>, vector<16x32xf32> -> vector<16x32xf32>
    %119 = arith.addf %115, %118 : vector<16x32xf32>
    %c0_62 = arith.constant 0 : index
    %c0_63 = arith.constant 0 : index
    %120 = vector.load %arg11[%c0_62, %c0_63] : memref<16x32xf32, #tpu.memory_space<vmem>>, vector<16x32xf32>
    tpu.vector_store %arg11[%c0_62, %c0_63], %119 {strides = array<i32>} : memref<16x32xf32, #tpu.memory_space<vmem>>, vector<16x32xf32>,
    %c0_64 = arith.constant 0 : index
    %c0_65 = arith.constant 0 : index
    %121 = vector.load %arg11[%c0_64, %c0_65] : memref<16x32xf32, #tpu.memory_space<vmem>>, vector<16x32xf32>
    %c0_66 = arith.constant 0 : index
    %c0_67 = arith.constant 0 : index
    %122 = vector.load %arg9[%c0_66, %c0_67] : memref<1x32xf32, #tpu.memory_space<vmem>>, vector<1x32xf32>
    %123 = vector.broadcast %122 : vector<1x32xf32> to vector<16x32xf32>
    %124 = arith.addf %121, %123 : vector<16x32xf32>
    %c0_68 = arith.constant 0 : index
    %c0_69 = arith.constant 0 : index
    %c0_70 = arith.constant 0 : index
    %125 = vector.load %arg10[%c0_68, %c0_69, %c0_70] : memref<1x16x32xf32, #tpu.memory_space<vmem>>, vector<1x16x32xf32>
    %126 = vector.shape_cast %125 : vector<1x16x32xf32> to vector<16x32xf32>
    %127 = vector.shape_cast %124 : vector<16x32xf32> to vector<1x16x32xf32>
    tpu.vector_store %arg10[%c0_68, %c0_69, %c0_70], %127 {strides = array<i32>} : memref<1x16x32xf32, #tpu.memory_space<vmem>>, vector<1x16x32xf32>,
    return
  }
  func.func @transform_0(%arg0: i32, %arg1: i32) -> (i32, i32, i32) {
    %c0_i32 = arith.constant 0 : i32
    %c0_i32_0 = arith.constant 0 : i32
    return %arg0, %arg1, %c0_i32 : i32, i32, i32
  }
  func.func @transform_1(%arg0: i32, %arg1: i32) -> (i32, i32, i32) {
    %c0_i32 = arith.constant 0 : i32
    %c0_i32_0 = arith.constant 0 : i32
    %c0_i32_1 = arith.constant 0 : i32
    return %arg0, %c0_i32, %c0_i32_0 : i32, i32, i32
  }
  func.func @transform_2(%arg0: i32, %arg1: i32) -> (i32, i32, i32) {
    %c0_i32 = arith.constant 0 : i32
    %c0_i32_0 = arith.constant 0 : i32
    %c0_i32_1 = arith.constant 0 : i32
    return %arg0, %c0_i32, %c0_i32_0 : i32, i32, i32
  }
  func.func @transform_3(%arg0: i32, %arg1: i32) -> (i32, i32) {
    %c0_i32 = arith.constant 0 : i32
    %c0_i32_0 = arith.constant 0 : i32
    %c0_i32_1 = arith.constant 0 : i32
    return %c0_i32, %c0_i32_0 : i32, i32
  }
  func.func @transform_4(%arg0: i32, %arg1: i32) -> (i32, i32) {
    %c0_i32 = arith.constant 0 : i32
    %c0_i32_0 = arith.constant 0 : i32
    %c0_i32_1 = arith.constant 0 : i32
    return %c0_i32, %c0_i32_0 : i32, i32
  }
  func.func @transform_5(%arg0: i32, %arg1: i32) -> (i32, i32) {
    %c0_i32 = arith.constant 0 : i32
    %c0_i32_0 = arith.constant 0 : i32
    %c0_i32_1 = arith.constant 0 : i32
    return %c0_i32, %c0_i32_0 : i32, i32
  }
  func.func @transform_6(%arg0: i32, %arg1: i32) -> (i32, i32) {
    %c0_i32 = arith.constant 0 : i32
    %c0_i32_0 = arith.constant 0 : i32
    %c0_i32_1 = arith.constant 0 : i32
    return %c0_i32, %c0_i32_0 : i32, i32
  }
  func.func @transform_7(%arg0: i32, %arg1: i32) -> (i32, i32) {
    %c0_i32 = arith.constant 0 : i32
    %c0_i32_0 = arith.constant 0 : i32
    %c0_i32_1 = arith.constant 0 : i32
    return %c0_i32, %c0_i32_0 : i32, i32
  }
  func.func @transform_8(%arg0: i32, %arg1: i32) -> (i32, i32, i32) {
    %c0_i32 = arith.constant 0 : i32
    %c0_i32_0 = arith.constant 0 : i32
    return %arg0, %arg1, %c0_i32 : i32, i32, i32
  }
}

</mosaic_0001>

<bundles_post_ra>
// kernel: tpu_custom_call.1
= control target key start
LH: loop header
LB: loop body
LE: loop exit
PB: predicated region body
PF: predicated region fallthrough
CT: control target
= control target key end

     0   :  { %s2620_s0 = inlined_call_operand.hbm [shape: bf16[2,16,32], index: 0, kind: input, shape index: {}]   ;;  %s2621_s1 = inlined_call_operand.hbm [shape: bf16[2,8,32], index: 1, kind: input, shape index: {}]   ;;  %s2622_s2 = inlined_call_operand.vmem [shape: f32[2,1,8], index: 2, kind: input, shape index: {}]   ;;  %s2623_s3 = inlined_call_operand.hbm [shape: bf16[32,32], index: 3, kind: input, shape index: {}]   ;;  %s2624_s4 = inlined_call_operand.hbm [shape: bf16[32,32], index: 4, kind: input, shape index: {}]   ;;  %s2625_s5 = inlined_call_operand.hbm [shape: bf16[32,32], index: 5, kind: input, shape index: {}]   ;;  %s2626_s6 = inlined_call_operand.hbm [shape: bf16[32,32], index: 6, kind: input, shape index: {}]   ;;  %s2627_s7 = inlined_call_operand.vmem [shape: f32[1,32], index: 7, kind: input, shape index: {}]   ;;  %s2628_s8 = inlined_call_operand.hbm [shape: f32[2,16,32], index: 8, kind: output, shape index: {}]  }
   0x1   :  { %2637 = sst [smem:[#allocation26_spill]] %s2620_s0 }
   0x2   :  { %2638 = sst [smem:[#allocation27_spill]] %s2623_s3 }
   0x3   :  { %2639 = sst [smem:[#allocation28_spill]] %s2624_s4 }
   0x4   :  { %2640 = sst [smem:[#allocation29_spill]] %s2625_s5 }
   0x5   :  { %2641 = sst [smem:[#allocation30_spill]] %s2626_s6 }
   0x6   :  { %13 = vsyncpa [#allocation4], 0 }
   0x7   :  { %15 = vsyncpa [#allocation4 + $0x1], 0 }
   0x8   :  { %16 = vsyncpa [#allocation7], 0 }
   0x9   :  { %18 = vsyncpa [#allocation7 + $0x1], 0 }
   0xa   :  { %19 = vsyncpa [#allocation10], 0 }
   0xb   :  { %20 = vsyncpa [#allocation13], 0 }
   0xc   :  { %21 = vsyncpa [#allocation5], 0 }
   0xd   :  { %23 = vsyncpa [#allocation5 + $0x1], 0  ;;  %s2219_s27 = smov 0   ;;  %s2221_s28 = smov 0  }
   0xe   :  { %s2223_s29 = smov 0   ;;  %s2225_s30 = smov 0  }
   0xf   :  { %s2227_s9 = smov 0   ;;  %s2229_s10 = smov 0  }
  0x10 LB: > { %2642 = sst [smem:[#allocation21_spill]] %s2144_s29  ;;  %s2250_s11 = sadd.s32 4294967295, %s2156_s10   ;;  %s2156_s10 = sphi %s2229_s10, %s29_s10   ;;  %s2152_s9 = sphi %s2227_s9, %s2675_s9   ;;  %s2148_s30 = sphi %s2225_s30, %s2674_s30   ;;  %s2144_s29 = sphi %s2223_s29, %s2670_s29   ;;  %s2140_s28 = sphi %s2221_s28, %s2673_s28   ;;  %s2136_s27 = sphi %s2219_s27, %s2672_s27  }
  0x11   : > { %2643 = sst [smem:[#allocation22_spill]] %s2156_s10  ;;  %s1564_s12 = sadd.s32 4294967294, %s2156_s10  }
  0x12   : > { %p63_p0 = scmp.ne.s32.totalorder %s2140_s28, %s2136_s27  ;;  %p2629_p1 = scmp.eq.s32.totalorder %s2250_s11, 0 }
  0x13   : > { %p246_p2 = scmp.eq.s32.totalorder %s2250_s11, 1  ;;  %p252_p3 = scmp.eq.s32.totalorder %s1564_s12, 1 }
  0x14   : > { %p2259_p4 = por %p2629_p1, %p63_p0  ;;  %p1565_p5 = scmp.ge.s32.totalorder %s2156_s10, 1 }
  0x15   : > { %p2264_p6 = por %p252_p3, %p63_p0  ;;  %p259_p7 = scmp.lt.s32.totalorder %s2156_s10, 3 }
  0x16   : > { %s2158_s16 = smov [#allocation8]   ;;  %s2159_s19 = smov [#allocation9]  }
  0x17   : > { %s2645_s14 = scalar_select %p2264_p6, 1, 0 }
  0x18   : > { %p2269_p8 = pnand %p1565_p5, %p259_p7  ;;  %s271_s17 = sshll.u32 %s2158_s16, 4  ;;  %s272_s17 = int_to_ptr.vmem [resolvable:$true] %s271_s17 }
  0x19   : > { %2646 = sst [smem:[#allocation23_spill]] %s2645_s14  ;;  %s284_s20 = sshll.u32 %s2159_s19, 4  ;;  %s285_s20 = int_to_ptr.vmem [resolvable:$true] %s284_s20 }
  0x1a   : > { %p1766_p9 = pneg %p2269_p8  ;;  %s2160_s21 = smov [#allocation11]  }
  0x1b   : > { %s297_s22 = sshll.u32 %s2160_s21, 4  ;;  %s1911_s23 = scalar_lea.vmem %s272_s17, 256  ;;  %s298_s22 = int_to_ptr.vmem [resolvable:$true] %s297_s22 }
  0x1c   : > { %p2278_p11 = pnand %p1766_p9, %p2629_p1  ;;  %p1912_p13 = scmp.ne.s32.totalorder %s272_s17, %s1911_s23 }
  0x1d   : > { %p1919_p5 = scmp.lt.s32.totalorder %s272_s17, %s272_s17  ;;  %p1920_p7 = scmp.lt.s32.totalorder %s1911_s23, %s1911_s23 }
  0x1e   : > { %p1902_p12 = pneg %p2278_p11 }
  0x1f   : > { %p1921_p9 = por %p1920_p7, %p1919_p5 }
  0x20   : > { %p1914_p0 = pnand %p1912_p13, %p1902_p12 }
  0x22   : > { %p1915_p3 = pneg %p1914_p0 }
  0x24   : > { %p1922_p10 = pnand %p1921_p9, %p1915_p3 }
  0x26   : > { %1925 = shalt.err (!%p1922_p10)
}
  0x27   : > { %s2630_s24 = smov 64   ;;  %s2631_s25 = smov 4  }
  0x28   : > { %s2649_s3 = sld [smem:[#allocation27_spill]]  ;;  %s1937_s16 = scalar_lea.vmem %s285_s20, 256 }
  0x29   : > { %p1938_p13 = scmp.ne.s32.totalorder %s285_s20, %s1937_s16  ;;  %p1945_p3 = scmp.lt.s32.totalorder %s285_s20, %s285_s20 }
  0x2a   : > { %p1946_p10 = scmp.lt.s32.totalorder %s1937_s16, %s1937_s16 }
  0x2b   : > { %p1940_p0 = pnand %p1938_p13, %p1902_p12 }
  0x2c   : > { %p1947_p7 = por %p1946_p10, %p1945_p3 }
  0x2d   : > { %p1941_p5 = pneg %p1940_p0 }
  0x2e   : > { %1769 = dma.hbm_to_vmem [thread:$0]  (!%p2278_p11), %s2649_s3, 256, %s272_s17, [#allocation7], %s2630_s24, %s2630_s24, %s2631_s25  }
  0x2f   : > { %p1948_p9 = pnand %p1947_p7, %p1941_p5 }
  0x31   : > { %1951 = shalt.err (!%p1948_p9)
}
  0x32   : > { %s2650_s4 = sld [smem:[#allocation28_spill]]  ;;  %s1963_s17 = scalar_lea.vmem %s298_s22, 256 }
  0x33   : > { %p1964_p1 = scmp.ne.s32.totalorder %s298_s22, %s1963_s17  ;;  %p1971_p3 = scmp.lt.s32.totalorder %s298_s22, %s298_s22 }
  0x34   : > { %p1972_p5 = scmp.lt.s32.totalorder %s1963_s17, %s1963_s17 }
  0x35   : > { %p1966_p13 = pnand %p1964_p1, %p1902_p12 }
  0x36   : > { %p1973_p10 = por %p1972_p5, %p1971_p3 }
  0x37   : > { %p1967_p0 = pneg %p1966_p13 }
  0x38   : > { %1772 = dma.hbm_to_vmem [thread:$0]  (!%p2278_p11), %s2650_s4, 256, %s285_s20, [#allocation10], %s2630_s24, %s2630_s24, %s2631_s25  }
  0x39   : > { %p1974_p7 = pnand %p1973_p10, %p1967_p0 }
  0x3b   : > { %1977 = shalt.err (!%p1974_p7)
}
  0x3c   : > { %s2651_s5 = sld [smem:[#allocation29_spill]]  ;;  %s2163_s20 = smov [#allocation12]  }
  0x3d   : > { %s310_s12 = sshll.u32 %s2163_s20, 4  ;;  %s311_s12 = int_to_ptr.vmem [resolvable:$true] %s310_s12 }
  0x3e   : > { %s1989_s16 = scalar_lea.vmem %s311_s12, 256  ;;  %p1997_p0 = scmp.lt.s32.totalorder %s311_s12, %s311_s12 }
  0x3f   : > { %p1990_p1 = scmp.ne.s32.totalorder %s311_s12, %s1989_s16  ;;  %p1998_p3 = scmp.lt.s32.totalorder %s1989_s16, %s1989_s16 }
  0x41   : > { %p1992_p9 = pnand %p1990_p1, %p1902_p12  ;;  %p1999_p5 = por %p1998_p3, %p1997_p0 }
  0x42   : > { %1775 = dma.hbm_to_vmem [thread:$0]  (!%p2278_p11), %s2651_s5, 256, %s298_s22, [#allocation10], %s2630_s24, %s2630_s24, %s2631_s25  }
  0x43   : > { %p1993_p13 = pneg %p1992_p9 }
  0x45   : > { %p2000_p10 = pnand %p1999_p5, %p1993_p13 }
  0x47   : > { %2003 = shalt.err (!%p2000_p10)
}
  0x48   : > { %s2652_s6 = sld [smem:[#allocation30_spill]]  ;;  %s41_s21 = sadd.s32 1, %s2152_s9 }
  0x49   : > { %s50_s18 = sadd.s32 1, %s2144_s29  ;;  %p43_p12 = scmp.ge.s32.totalorder %s41_s21, 2 }
  0x4a   : > { %p57_p7 = scmp.ne.s32.totalorder %s2144_s29, %s2140_s28  ;;  %p58_p1 = scmp.eq.s32.totalorder %s2156_s10, 0 }
  0x4b   : > { %p1794_p9 = scmp.lt.s32.totalorder %s2156_s10, 2  ;;  %s2677_s21 = smov (%p43_p12, %s41_s21), 0 }
  0x4c   : > { %2653 = sst [smem:[#allocation24_spill]] %s2677_s21  ;;  %p59_p13 = por %p58_p1, %p57_p7 }
  0x4d   : > { %p2338_p0 = por %p246_p2, %p57_p7  ;;  %s45_s23 = ssub.s32 %s2152_s9, %s2677_s21 }
  0x4e   : > { %1778 = dma.hbm_to_vmem [thread:$0]  (!%p2278_p11), %s2652_s6, 256, %s311_s12, [#allocation13], %s2630_s24, %s2630_s24, %s2631_s25  }
  0x4f   : > { %s2345_s26 = sand.u32 1, %s2144_s29   ;;  %p48_p11 = scmp.eq.s32.totalorder %s45_s23, 0 }
  0x50   : > { %s1571_s20 = sshll.u32 %s2345_s26, 3  ;;  %s1613_s12 = sshll.u32 %s2152_s9, 7 }
  0x51   : > { %s2350_s16 = scalar_select %p48_p11, %s2144_s29, %s50_s18  }
  0x52   : > { %s2656_s0 = sld [smem:[#allocation26_spill]]  ;;  %s331_s25 = scalar_lea.vmem [#allocation3], %s1571_s20 }
  0x53   : > { %2655 = sst [smem:[#allocation25_spill]] %s2350_s16  ;;  %s340_s3 = sshll.u32 %s331_s25, 4  ;;  %s341_s3 = int_to_ptr.vmem [resolvable:$true] %s340_s3 }
  0x54   : > { %p2357_p2 = pnand %p1794_p9, %p59_p13  ;;  %s350_s5 = sand.u32 1, %s2156_s10  }
  0x55   : > { %s328_s23 = scalar_lea.sflag [#allocation4], %s2345_s26  ;;  %s2017_s18 = scalar_lea.vmem %s341_s3, 128 }
  0x56   : > { %p2006_p3 = pneg %p2357_p2  ;;  %p2018_p5 = scmp.ne.s32.totalorder %s341_s3, %s2017_s18 }
  0x57   : > { %s2164_s20 = smov [#allocation3]  }
  0x58   : > { %s339_s24 = scalar_lea.hbm %s2656_s0, %s1613_s12  ;;  %p2020_p10 = pnand %p2018_p5, %p2006_p3 }
  0x59   : > { %s2022_s25 = sshll.u32 %s2164_s20, 4  ;;  %s2023_s25 = int_to_ptr.vmem [resolvable:$false] %s2022_s25 }
  0x5a   : > { %p2021_p12 = pneg %p2020_p10  ;;  %s2024_s12 = scalar_lea.vmem %s2023_s25, 256 }
  0x5b   : > { %p2025_p7 = scmp.lt.s32.totalorder %s341_s3, %s2023_s25  ;;  %p2026_p1 = scmp.lt.s32.totalorder %s2024_s12, %s2017_s18 }
  0x5d   : > { %p2027_p9 = por %p2026_p1, %p2025_p7 }
  0x5f   : > { %p2028_p13 = pnand %p2027_p9, %p2021_p12 }
  0x61   : > { %2031 = shalt.err (!%p2028_p13)
}
  0x62   : > { %s2658_s22 = smov 4   ;;  %s2659_s19 = smov 64  }
  0x63   : > { %1782 = dma.hbm_to_vmem [thread:$0]  (!%p2357_p2), %s339_s24, 128, %s341_s3, %s328_s23, %s2659_s19, %s2659_s19, %s2658_s22  }
  0x64   : > { %s1574_s0 = sshll.u32 %s2345_s26, 2  ;;  %s1575_s6 = sshll.u32 %s2152_s9, 6 }
  0x65   : > { %s359_s16 = scalar_lea.hbm %s2621_s1, %s1575_s6  ;;  %s354_s25 = scalar_lea.vmem [#allocation6], %s1574_s0 }
  0x66   : > { %s361_s18 = sshll.u32 %s354_s25, 4  ;;  %s351_s12 = scalar_lea.sflag [#allocation7], %s350_s5  ;;  %s362_s18 = int_to_ptr.vmem [resolvable:$true] %s361_s18 }
  0x67   : > { %s2045_s29 = scalar_lea.vmem %s362_s18, 64  ;;  %s2165_s10 = smov [#allocation6]  }
  0x68   : > { %p2046_p11 = scmp.ne.s32.totalorder %s362_s18, %s2045_s29  ;;  %s2050_s14 = sshll.u32 %s2165_s10, 4  ;;  %s2051_s14 = int_to_ptr.vmem [resolvable:$false] %s2050_s14 }
  0x69   : > { %s2052_s3 = scalar_lea.vmem %s2051_s14, 128  ;;  %p2053_p12 = scmp.lt.s32.totalorder %s362_s18, %s2051_s14 }
  0x6a   : > { %p2048_p5 = pnand %p2046_p11, %p2006_p3  ;;  %p2054_p7 = scmp.lt.s32.totalorder %s2052_s3, %s2045_s29 }
  0x6c   : > { %p2049_p10 = pneg %p2048_p5  ;;  %p2055_p1 = por %p2054_p7, %p2053_p12 }
  0x6e   : > { %p2056_p9 = pnand %p2055_p1, %p2049_p10 }
  0x70   : > { %2059 = shalt.err (!%p2056_p9)
}
  0x71   : > { %1785 = dma.hbm_to_vmem [thread:$0]  (!%p2357_p2), %s359_s16, 64, %s362_s18, %s351_s12  }
  0x72   : > { %376 = sbr.rel (%p2269_p8) target bundleno = 2852 (0xb24), region = 52  ;;  %s2386_s0 = sand.u32 (!%p2269_p8), 1, %s2140_s28  }
  0x73   : > { %s1577_s5 = sshll.u32 (!%p2269_p8), %s2386_s0, 3  ;;  %s379_s6 = scalar_lea.sflag (!%p2269_p8), [#allocation4], %s2386_s0 }
  0x74   : > { %s2390_s10 = scalar_lea.vmem (!%p2269_p8), [#allocation3], %s1577_s5 }
  0x77   : > { %2111 = dma.done.wait (%p2259_p4), %s379_s6, 128  }
  0x78   : > { %2113 = vsyncadd (%p2259_p4), %s379_s6, 4294967168  ;;  %s387_s4 = sand.u32 1, %s2250_s11   ;;  %s1578_s29 = sshll.u32 %s2386_s0, 2 }
  0x79   : > { %s388_s14 = scalar_lea.sflag [#allocation7], %s387_s4  ;;  %s391_s15 = scalar_lea.vmem [#allocation6], %s1578_s29 }
  0x7a   : > { %2115 = dma.done.wait (%p2259_p4), %s388_s14, 64  }
  0x7b   : > { %2117 = vsyncadd (%p2259_p4), %s388_s14, 4294967232  ;;  %p2660_p8 = scmp.eq.s32.totalorder %s2250_s11, 0 }
  0x7d   : > { %2119 = dma.done.wait (%p2660_p8), [#allocation7], 256   ;;  %p2661_p2 = pmov %p2660_p8 }
  0x7f   : > { %2121 = vsyncadd (%p2661_p2), [#allocation7], 4294967040  ;;  %p2662_p3 = pmov %p2661_p2 }
  0x80   : > { %p2663_p13 = pmov %p2661_p2 }
  0x81   : > { %2123 = dma.done.wait (%p2662_p3), [#allocation10], 512  }
  0x82   : > { %2125 = vsyncadd (%p2663_p13), [#allocation10], 4294966784  ;;  %p2664_p11 = pmov %p2661_p2 }
  0x83   : > { %p2665_p5 = pmov %p2661_p2 }
  0x84   : > { %2127 = dma.done.wait (%p2664_p11), [#allocation13], 256  }
  0x85   : > { %2129 = vsyncadd (%p2665_p5), [#allocation13], 4294967040  ;;  %vm479_vm0 = vcmask 261120   ;;  %v2166_v0 = vmov 0.0   ;;  %vm2167_vm1 = vmmov 0   ;;  %v1861_v1 = vld [vmem:[#allocation8 + $0x8] sm:$0xff]  }
  0x86   : > { %1648 = vmatprep.subr.bf16.mxu0 %v2166_v0  ;;  %1656 = vmatprep.subr.bf16.mxu1 %v2166_v0  ;;  %642 = vst.msk [vmem:[#allocation2] sm:$0xff] %vm479_vm0, %v2166_v0  ;;  %643 = vst.msk [vmem:[#allocation2 + $0x8] sm:$0xff] %vm479_vm0, %v2166_v0  ;;  %v1862_v2 = vld [vmem:[#allocation9 + $0x8] sm:$0xff]   ;;  %v1863_v3 = vld [vmem:[#allocation8] sm:$0xff]   ;;  %vm644_vm2 = vcmask 64512   ;;  %p449_p4 = scmp.lt.s32.totalorder %s2148_s30, 1 }
  0x87   : > { %1652 = vmatprep.mubr.msk.bf16.mxu0 %vm2167_vm1, %v2166_v0  ;;  %1660 = vmatprep.mubr.msk.bf16.mxu1 %vm2167_vm1, %v2166_v0  ;;  %v1864_v4 = vld [vmem:[#allocation9] sm:$0xff]   ;;  %v456_v6 = vld [vmem:[%s391_s15] sm:$0xf]  ;;  %v1866_v18 = vld [vmem:[#allocation11 + $0x8] sm:$0xff]   ;;  %s2168_s26 = smov 120   ;;  %vm728_vm3 = vcmask 1043456  }
  0x88   : > { %1649 = vmatpush3.bf16.msra.mxu0 %v1861_v1  ;;  %1657 = vmatpush3.bf16.msra.mxu1 %v1862_v2  ;;  %v1865_v5 = vld [vmem:[%s2390_s10] sm:$0xff]   ;;  %v1867_v19 = vld [vmem:[#allocation11] sm:$0xff]   ;;  %s450_s11 = scalar_select %p449_p4, %s2148_s30, 1 }
  0x89   : > { %1650 = vmatprep.subr.bf16.mxu0 %v2166_v0  ;;  %1658 = vmatprep.subr.bf16.mxu1 %v2166_v0  ;;  %v776_v57 = vld [vmem:[#allocation12] sm:$0xf]  ;;  %s2169_s16 = smov 112   ;;  %s2170_s23 = smov 104  }
  0x8a   : > { %s451_s21 = scalar_lea.vmem %s2622_s2, %s450_s11  ;;  %v781_v58 = vsel %vm728_vm3, %v776_v57, 0  ;;  %s1583_s22 = sshll.u32 %s2386_s0, 4 }
  0x8b   : > { %v2456_v21 = vld [vmem:[%s451_s21] ss:$0 sm:$0xff]  ;;  %s1614_s25 = sshll.u32 %s2148_s30, 8  ;;  %s447_s18 = scalar_lea.vmem [#allocation14], %s1583_s22 }
  0x8c   : > { %1651 = vmatpush3.bf16.msra.mxu0 %v1863_v3  ;;  %1659 = vmatpush3.bf16.msra.mxu1 %v1864_v4  ;;  %s1406_s12 = sshll.u32 %s447_s18, 4  ;;  %s2569_s6 = scalar_lea.hbm %s2628_s8, %s1614_s25  ;;  %s2571_s12 = int_to_ptr.vmem [resolvable:$true] %s1406_s12 }
  0x8d   : > { %1664 = vmatprep.subr.bf16.mxu0 %v2166_v0  ;;  %1672 = vmatprep.subr.bf16.mxu1 %v2166_v0  ;;  %s1391_s10 = scalar_lea.sflag [#allocation5], %s2386_s0  ;;  %s2060_s30 = scalar_lea.vmem %s2571_s12, 256 }
  0x8e   : > { %p2061_p10 = scmp.ne.s32.totalorder %s2571_s12, %s2060_s30  ;;  %s2171_s4 = smov [#allocation14]  }
  0x8f   : > { %1653 = vmatmul.mubr.msk.bf16.vlgmr.msra.gmra.mxu0 %vm479_vm0, %v1865_v5  ;;  %1661 = vmatmul.mubr.msk.bf16.vlgmr.msra.gmra.mxu1 %vm479_vm0, %v456_v6  ;;  %s2064_s29 = sshll.u32 %s2171_s4, 4  ;;  %s2065_s29 = int_to_ptr.vmem [resolvable:$false] %s2064_s29 }
  0x90   : > { %1668 = vmatprep.mubr.msk.bf16.mxu0 %vm2167_vm1, %v2166_v0  ;;  %1674 = vmatprep.mubr.msk.bf16.mxu1 %vm2167_vm1, %v2166_v0  ;;  %p2062_p12 = pnand %p2061_p10, %p2338_p0  ;;  %s2066_s14 = scalar_lea.vmem %s2065_s29, 512 }
  0x91   : > { %1665 = vmatpush3.bf16.msra.mxu0 %v1866_v18  ;;  %p2067_p1 = scmp.lt.s32.totalorder %s2571_s12, %s2065_s29  ;;  %p2068_p9 = scmp.lt.s32.totalorder %s2066_s14, %s2060_s30 }
  0x92   : > { %1666 = vmatprep.subr.bf16.mxu0 %v2166_v0  ;;  %p2063_p7 = pneg %p2062_p12 }
  0x93   : > { %p2069_p8 = por %p2068_p9, %p2067_p1 }
  0x95   : > { %1667 = vmatpush3.bf16.msra.mxu0 %v1867_v19  ;;  %p2070_p2 = pnand %p2069_p8, %p2063_p7 }
  0x96   : > { %1678 = vmatprep.subr.bf16.mxu0 %v2166_v0 }
  0x98   : > { %1669 = vmatmul.mubr.msk.bf16.vlgmr.msra.gmra.mxu0 %vm479_vm0, %v456_v6 }
  0x99   : > { %1680 = vmatprep.mubr.msk.bf16.mxu0 %vm2167_vm1, %v2166_v0 }
 0x14f   : > { %v517_v7 = vpop.f32.mrf.mxu0  ;;  %v578_v8 = vpop.f32.mrf.mxu1 }
 0x150   : > { %v2435_v9 = vpack.c.bf16 %v578_v8, %v578_v8 }
 0x151   : > { %v1654_v10 = vpop.f32.mrf.mxu0  ;;  %v1662_v11 = vpop.f32.mrf.mxu1 }
 0x152   : > { %v649_v13 = vsel %vm644_vm2, %v2435_v9, 0 }
 0x153   : > { %v520_v12 = vpop.f32.mrf.mxu0  ;;  %v581_v14 = vpop.f32.mrf.mxu1  ;;  %1673 = vmatpush3.bf16.xpose.msra.mxu1 %v649_v13 }
 0x154   : > { %1684 = vmatprep.subr.bf16.mxu1 %v2166_v0  ;;  %v2440_v17 = vpack.c.bf16 %v520_v12, %v517_v7 }
 0x155   : > { %v1655_v15 = vpop.f32.mrf.mxu0  ;;  %v1663_v16 = vpop.f32.mrf.mxu1 }
 0x158   : > { %v635_v41 = vpop.f32.mrf.mxu0 }
 0x159   : > { %v2466_v42 = vpack.c.bf16 %v635_v41, %v635_v41 }
 0x15a   : > { %1675 = vmatmul.mubr.msk.bf16.vlgmr.msra.gmra.mxu1 %vm644_vm2, %v2440_v17  ;;  %v1670_v43 = vpop.f32.mrf.mxu0 }
 0x15b   : > { %1686 = vmatprep.mubr.msk.bf16.mxu1 %vm2167_vm1, %v2166_v0  ;;  %v730_v45 = vsel %vm728_vm3, %v2466_v42, 0  ;;  %1685 = vmatpush3.bf16.msra.mxu1 %v781_v58 }
 0x15c   : > { %v638_v44 = vpop.f32.mrf.mxu0  ;;  %1679 = vmatpush3.bf16.msra.mxu0 %v730_v45  ;;  %1696 = vmatprep.subr.bf16.mxu1 %v2166_v0  ;;  %v961_v45 = vld [vmem:[#allocation12 + $0x4] sm:$0xf] }
 0x15d   : > { %1690 = vmatprep.subr.bf16.mxu0 %v2166_v0 }
 0x15e   : > { %v1671_v46 = vpop.f32.mrf.mxu0 }
 0x15f   : > { %v966_v46 = vsel %vm728_vm3, %v961_v45, 0 }
 0x21a   : > { %v685_v20 = vpop.f32.mrf.mxu1 }
 0x21b   : > { %v692_v22 = vmul.f32 0.35355338, %v685_v20 }
 0x21c   : > { %v1676_v23 = vpop.f32.mrf.mxu1 }
 0x21d   : > { %v700_v24 = vadd.f32 %v2456_v21, %v692_v22 }
 0x21e   : > { %v688_v25 = vpop.f32.mrf.mxu1 }
 0x21f   : > { %v693_v26 = vmul.f32 0.35355338, %v688_v25  ;;  %v702_v27 = vsel %vm644_vm2, %v700_v24, -inf }
 0x220   : > { %703 = vmax.xlane.f32.xlu0 %v702_v27  ;;  %v1677_v28 = vpop.f32.mrf.mxu1 }
 0x221   : > { %v701_v29 = vadd.f32 %v2456_v21, %v693_v26  ;;  %v774_v28 = vld [vmem:[#allocation2 + $0x8] sm:$0xff] }
 0x223   : > { %v705_v30 = vsel %vm644_vm2, %v701_v29, -inf }
 0x224   : > { %706 = vmax.xlane.f32.xlu0 %v705_v30 }
 0x23a   : > { %832 = vrot.lane.b32.xlu0 %v2435_v9, %s2168_s26 }
 0x2a9   : > { %v704_v31 = vpop.xlane.xlu0 %703 }
 0x2aa   : > { %v708_v32 = vsub.f32 %v700_v24, %v704_v31  ;;  %v773_v24 = vld [vmem:[#allocation2] sm:$0xff] }
 0x2ac   : > { %v710_v33 = vmul.f32 1.442695, %v708_v32 }
 0x2ad   : > { %v707_v34 = vpop.xlane.xlu0 %706 }
 0x2ae   : > { %1868 = vpow2.f32 %v710_v33  ;;  %v709_v35 = vsub.f32 %v701_v29, %v707_v34 }
 0x2b0   : > { %v712_v36 = vmul.f32 1.442695, %v709_v35 }
 0x2b1   : > { %v833_v53 = vpop.permute.xlu0 %832 }
 0x2b2   : > { %1870 = vpow2.f32 %v712_v36  ;;  %v838_v55 = vsel %vm644_vm2, %v833_v53, 0 }
 0x2bb   : > { %v1869_v37 = vpop.eup %1868 }
 0x2bc   : > { %v714_v38 = vsel %vm644_vm2, %v1869_v37, 0.0 }
 0x2bd   : > { %715 = vadd.xlane.f32.xlu1 %v714_v38 }
 0x2bf   : > { %v1871_v39 = vpop.eup %1870 }
 0x2c0   : > { %v717_v40 = vsel %vm644_vm2, %v1871_v39, 0.0 }
 0x2c1   : > { %718 = vadd.xlane.f32.xlu1 %v717_v40 }
 0x2d2   : > { %829 = vrot.lane.b32.xlu1 %v2440_v17, %s2168_s26 }
 0x346   : > { %v716_v47 = vpop.xlane.xlu1 %715 }
 0x347   : > { %1872 = vrcp.f32 %v716_v47 }
 0x34a   : > { %v719_v48 = vpop.xlane.xlu1 %718 }
 0x34b   : > { %1874 = vrcp.f32 %v719_v48 }
 0x34e   : > { %v830_v56 = vpop.permute.xlu1 %829 }
 0x354   : > { %v1873_v49 = vpop.eup %1872 }
 0x355   : > { %v722_v51 = vmul.f32 %v1873_v49, %v1869_v37 }
 0x358   : > { %v1875_v50 = vpop.eup %1874 }
 0x359   : > { %v723_v52 = vmul.f32 %v1875_v50, %v1871_v39 }
 0x35b   : > { %v724_v54 = vpack.c.bf16 %v723_v52, %v722_v51 }
 0x35d   : > { %1681 = vmatmul.mubr.msk.bf16.vlgmr.msra.gmra.mxu0 %vm644_vm2, %v724_v54 }
 0x35e   : > { %1691 = vmatpush3.bf16.xpose.msra.mxu0 %v838_v55  ;;  %1692 = vmatprep.mubr.msk.bf16.mxu0 %vm2167_vm1, %v2166_v0 }
 0x35f   : > { %1702 = vmatprep.subr.bf16.mxu0 %v2166_v0 }
 0x365   : > { %1693 = vmatmul.mubr.msk.bf16.vlgmr.msra.gmra.mxu0 %vm644_vm2, %v830_v56 }
 0x366   : > { %1704 = vmatprep.mubr.msk.bf16.mxu0 %vm2167_vm1, %v2166_v0  ;;  %1703 = vmatpush3.bf16.msra.mxu0 %v966_v46 }
 0x367   : > { %1714 = vmatprep.subr.bf16.mxu0 %v2166_v0 }
 0x41d   : > { %v766_v59 = vpop.f32.mrf.mxu0 }
 0x41f   : > { %v1682_v60 = vpop.f32.mrf.mxu0 }
 0x421   : > { %v769_v61 = vpop.f32.mrf.mxu0 }
 0x422   : > { %v775_v62 = vpack.c.bf16 %v769_v61, %v766_v59 }
 0x423   : > { %v1683_v63 = vpop.f32.mrf.mxu0 }
 0x424   : > { %1687 = vmatmul.mubr.msk.bf16.vlgmr.msra.gmra.mxu1 %vm644_vm2, %v775_v62 }
 0x425   : > { %v874_v1 = vpop.f32.mrf.mxu0  ;;  %1698 = vmatprep.mubr.msk.bf16.mxu1 %vm2167_vm1, %v2166_v0 }
 0x426   : > { %v881_v2 = vmul.f32 0.35355338, %v874_v1 }
 0x427   : > { %v1694_v3 = vpop.f32.mrf.mxu0 }
 0x428   : > { %v883_v4 = vadd.f32 %v2456_v21, %v881_v2 }
 0x429   : > { %v877_v5 = vpop.f32.mrf.mxu0 }
 0x42a   : > { %v882_v6 = vmul.f32 0.35355338, %v877_v5  ;;  %v885_v7 = vsel %vm644_vm2, %v883_v4, -inf }
 0x42b   : > { %886 = vmax.xlane.f32.xlu1 %v885_v7  ;;  %v1695_v8 = vpop.f32.mrf.mxu0 }
 0x42c   : > { %v884_v10 = vadd.f32 %v2456_v21, %v882_v6 }
 0x42e   : > { %v888_v11 = vsel %vm644_vm2, %v884_v10, -inf }
 0x42f   : > { %889 = vmax.xlane.f32.xlu0 %v888_v11 }
 0x4b4   : > { %v887_v12 = vpop.xlane.xlu1 %886 }
 0x4b5   : > { %v891_v13 = vsub.f32 %v883_v4, %v887_v12 }
 0x4b7   : > { %v893_v14 = vmul.f32 1.442695, %v891_v13 }
 0x4b8   : > { %v890_v15 = vpop.xlane.xlu0 %889 }
 0x4b9   : > { %1876 = vpow2.f32 %v893_v14  ;;  %v892_v16 = vsub.f32 %v884_v10, %v890_v15 }
 0x4bb   : > { %v895_v18 = vmul.f32 1.442695, %v892_v16 }
 0x4bd   : > { %1878 = vpow2.f32 %v895_v18 }
 0x4c6   : > { %v1877_v19 = vpop.eup %1876 }
 0x4c7   : > { %v897_v20 = vsel %vm644_vm2, %v1877_v19, 0.0 }
 0x4c8   : > { %898 = vadd.xlane.f32.xlu0 %v897_v20 }
 0x4ca   : > { %v1879_v22 = vpop.eup %1878 }
 0x4cb   : > { %v900_v23 = vsel %vm644_vm2, %v1879_v22, 0.0 }
 0x4cc   : > { %901 = vadd.xlane.f32.xlu1 %v900_v23 }
 0x4dd   : > { %1015 = vrot.lane.b32.xlu1 %v2435_v9, %s2169_s16 }
 0x4de   : > { %909 = vrot.lane.b32.xlu0 %v2466_v42, %s2168_s26 }
 0x4e1   : > { %1013 = vrot.lane.b32.xlu1 %v2440_v17, %s2169_s16 }
 0x4e4   : > { %v817_v25 = vpop.f32.mrf.mxu1 }
 0x4e5   : > { %v824_v26 = vadd.f32 %v817_v25, %v773_v24 }
 0x4e6   : > { %v1688_v27 = vpop.f32.mrf.mxu1 }
 0x4e7   : > { %826 = vst.msk [vmem:[#allocation2] sm:$0xff] %vm479_vm0, %v824_v26 }
 0x4e8   : > { %v820_v29 = vpop.f32.mrf.mxu1 }
 0x4e9   : > { %v825_v30 = vadd.f32 %v820_v29, %v774_v28 }
 0x4ea   : > { %v1689_v31 = vpop.f32.mrf.mxu1 }
 0x4eb   : > { %827 = vst.msk [vmem:[#allocation2 + $0x8] sm:$0xff] %vm479_vm0, %v825_v30  ;;  %v1143_v30 = vld [vmem:[#allocation12 + $0x8] sm:$0xf] }
 0x4ec   : > { %v1148_v31 = vsel %vm728_vm3, %v1143_v30, 0 }
 0x4ee   : > { %v958_v11 = vld [vmem:[#allocation2] sm:$0xff] }
 0x4f2   : > { %v959_v15 = vld [vmem:[#allocation2 + $0x8] sm:$0xff] }
 0x551   : > { %v899_v32 = vpop.xlane.xlu0 %898 }
 0x552   : > { %1880 = vrcp.f32 %v899_v32 }
 0x555   : > { %v902_v33 = vpop.xlane.xlu1 %901  ;;  %v910_v34 = vpop.permute.xlu0 %909 }
 0x556   : > { %1882 = vrcp.f32 %v902_v33  ;;  %v915_v35 = vsel %vm728_vm3, %v910_v34, 0 }
 0x557   : > { %1697 = vmatpush3.bf16.msra.mxu1 %v915_v35 }
 0x558   : > { %1708 = vmatprep.subr.bf16.mxu1 %v2166_v0 }
 0x559   : > { %v1016_v40 = vpop.permute.xlu1 %1015 }
 0x55a   : > { %v1021_v43 = vsel %vm644_vm2, %v1016_v40, 0 }
 0x55d   : > { %v1014_v44 = vpop.permute.xlu1 %1013 }
 0x55f   : > { %v1881_v36 = vpop.eup %1880 }
 0x560   : > { %v905_v38 = vmul.f32 %v1881_v36, %v1877_v19 }
 0x563   : > { %v1883_v37 = vpop.eup %1882 }
 0x564   : > { %v906_v39 = vmul.f32 %v1883_v37, %v1879_v22 }
 0x566   : > { %v907_v41 = vpack.c.bf16 %v906_v39, %v905_v38 }
 0x568   : > { %1699 = vmatmul.mubr.msk.bf16.vlgmr.msra.gmra.mxu1 %vm644_vm2, %v907_v41 }
 0x569   : > { %1709 = vmatpush3.bf16.xpose.msra.mxu1 %v1021_v43  ;;  %1710 = vmatprep.mubr.msk.bf16.mxu1 %vm2167_vm1, %v2166_v0 }
 0x56a   : > { %1720 = vmatprep.subr.bf16.mxu1 %v2166_v0 }
 0x570   : > { %1711 = vmatmul.mubr.msk.bf16.vlgmr.msra.gmra.mxu1 %vm644_vm2, %v1014_v44 }
 0x571   : > { %1722 = vmatprep.mubr.msk.bf16.mxu1 %vm2167_vm1, %v2166_v0  ;;  %1721 = vmatpush3.bf16.msra.mxu1 %v1148_v31 }
 0x572   : > { %1732 = vmatprep.subr.bf16.mxu1 %v2166_v0 }
 0x628   : > { %v951_v47 = vpop.f32.mrf.mxu1 }
 0x62a   : > { %v1700_v48 = vpop.f32.mrf.mxu1 }
 0x62c   : > { %v954_v49 = vpop.f32.mrf.mxu1 }
 0x62d   : > { %v960_v50 = vpack.c.bf16 %v954_v49, %v951_v47 }
 0x62e   : > { %v1701_v51 = vpop.f32.mrf.mxu1 }
 0x62f   : > { %1705 = vmatmul.mubr.msk.bf16.vlgmr.msra.gmra.mxu0 %vm644_vm2, %v960_v50 }
 0x630   : > { %v1057_v52 = vpop.f32.mrf.mxu1  ;;  %1716 = vmatprep.mubr.msk.bf16.mxu0 %vm2167_vm1, %v2166_v0 }
 0x631   : > { %v1064_v53 = vmul.f32 0.35355338, %v1057_v52 }
 0x632   : > { %v1712_v54 = vpop.f32.mrf.mxu1 }
 0x633   : > { %v1066_v55 = vadd.f32 %v2456_v21, %v1064_v53 }
 0x634   : > { %v1060_v56 = vpop.f32.mrf.mxu1 }
 0x635   : > { %v1065_v57 = vmul.f32 0.35355338, %v1060_v56  ;;  %v1068_v58 = vsel %vm644_vm2, %v1066_v55, -inf }
 0x636   : > { %1069 = vmax.xlane.f32.xlu1 %v1068_v58  ;;  %v1713_v59 = vpop.f32.mrf.mxu1 }
 0x637   : > { %v1067_v60 = vadd.f32 %v2456_v21, %v1065_v57 }
 0x639   : > { %v1071_v61 = vsel %vm644_vm2, %v1067_v60, -inf }
 0x63a   : > { %1072 = vmax.xlane.f32.xlu0 %v1071_v61 }
 0x647   : > { %1091 = vrot.lane.b32.xlu1 %v2466_v42, %s2169_s16 }
 0x64b   : > { %1195 = vrot.lane.b32.xlu1 %v2440_v17, %s2170_s23 }
 0x6bf   : > { %v1070_v62 = vpop.xlane.xlu1 %1069 }
 0x6c0   : > { %v1074_v63 = vsub.f32 %v1066_v55, %v1070_v62 }
 0x6c2   : > { %v1076_v1 = vmul.f32 1.442695, %v1074_v63 }
 0x6c3   : > { %v1092_v2 = vpop.permute.xlu1 %1091  ;;  %v1073_v3 = vpop.xlane.xlu0 %1072 }
 0x6c4   : > { %1884 = vpow2.f32 %v1076_v1  ;;  %v1097_v4 = vsel %vm728_vm3, %v1092_v2, 0  ;;  %v1075_v5 = vsub.f32 %v1067_v60, %v1073_v3 }
 0x6c5   : > { %1715 = vmatpush3.bf16.msra.mxu0 %v1097_v4 }
 0x6c6   : > { %v1078_v6 = vmul.f32 1.442695, %v1075_v5  ;;  %1726 = vmatprep.subr.bf16.mxu0 %v2166_v0 }
 0x6c7   : > { %v1196_v29 = vpop.permute.xlu1 %1195 }
 0x6c8   : > { %1886 = vpow2.f32 %v1078_v6 }
 0x6d1   : > { %v1885_v7 = vpop.eup %1884 }
 0x6d2   : > { %v1080_v8 = vsel %vm644_vm2, %v1885_v7, 0.0 }
 0x6d3   : > { %1081 = vadd.xlane.f32.xlu0 %v1080_v8 }
 0x6d5   : > { %v1887_v10 = vpop.eup %1886 }
 0x6d6   : > { %v1083_v17 = vsel %vm644_vm2, %v1887_v10, 0.0 }
 0x6d7   : > { %1084 = vadd.xlane.f32.xlu0 %v1083_v17 }
 0x6ed   : > { %1197 = vrot.lane.b32.xlu0 %v2435_v9, %s2170_s23 }
 0x6ef   : > { %v1002_v12 = vpop.f32.mrf.mxu0 }
 0x6f0   : > { %v1009_v13 = vadd.f32 %v1002_v12, %v958_v11 }
 0x6f1   : > { %v1706_v14 = vpop.f32.mrf.mxu0 }
 0x6f2   : > { %1011 = vst.msk [vmem:[#allocation2] sm:$0xff] %vm479_vm0, %v1009_v13 }
 0x6f3   : > { %v1005_v16 = vpop.f32.mrf.mxu0 }
 0x6f4   : > { %v1010_v18 = vadd.f32 %v1005_v16, %v959_v15 }
 0x6f5   : > { %v1707_v19 = vpop.f32.mrf.mxu0 }
 0x6f6   : > { %1012 = vst.msk [vmem:[#allocation2 + $0x8] sm:$0xff] %vm479_vm0, %v1010_v18 }
 0x6fd   : > { %v1141_v60 = vld [vmem:[#allocation2 + $0x8] sm:$0xff] }
 0x75c   : > { %v1082_v20 = vpop.xlane.xlu0 %1081 }
 0x75d   : > { %1888 = vrcp.f32 %v1082_v20 }
 0x760   : > { %v1085_v22 = vpop.xlane.xlu0 %1084 }
 0x761   : > { %1890 = vrcp.f32 %v1085_v22 }
 0x764   : > { %v1198_v26 = vpop.permute.xlu0 %1197 }
 0x765   : > { %v1203_v28 = vsel %vm644_vm2, %v1198_v26, 0 }
 0x76a   : > { %v1889_v23 = vpop.eup %1888 }
 0x76b   : > { %v1088_v25 = vmul.f32 %v1889_v23, %v1885_v7 }
 0x76e   : > { %v1891_v24 = vpop.eup %1890 }
 0x76f   : > { %v1089_v9 = vmul.f32 %v1891_v24, %v1887_v10  ;;  %v1325_v10 = vld [vmem:[#allocation12 + $0xc] sm:$0xf] }
 0x770   : > { %v1330_v17 = vsel %vm728_vm3, %v1325_v10, 0 }
 0x771   : > { %v1090_v27 = vpack.c.bf16 %v1089_v9, %v1088_v25  ;;  %v1607_v9 = vld [vmem:[%s2627_s7] ss:$0 sm:$0xff] }
 0x773   : > { %1717 = vmatmul.mubr.msk.bf16.vlgmr.msra.gmra.mxu0 %vm644_vm2, %v1090_v27 }
 0x774   : > { %1727 = vmatpush3.bf16.xpose.msra.mxu0 %v1203_v28  ;;  %1728 = vmatprep.mubr.msk.bf16.mxu0 %vm2167_vm1, %v2166_v0 }
 0x775   : > { %1738 = vmatprep.subr.bf16.mxu0 %v2166_v0 }
 0x77b   : > { %1729 = vmatmul.mubr.msk.bf16.vlgmr.msra.gmra.mxu0 %vm644_vm2, %v1196_v29 }
 0x77c   : > { %1740 = vmatprep.mubr.msk.bf16.mxu0 %vm2167_vm1, %v2166_v0  ;;  %1739 = vmatpush3.bf16.msra.mxu0 %v1330_v17 }
 0x833   : > { %v1133_v32 = vpop.f32.mrf.mxu0 }
 0x835   : > { %v1718_v33 = vpop.f32.mrf.mxu0 }
 0x837   : > { %v1136_v34 = vpop.f32.mrf.mxu0 }
 0x838   : > { %v1142_v35 = vpack.c.bf16 %v1136_v34, %v1133_v32 }
 0x839   : > { %v1719_v36 = vpop.f32.mrf.mxu0 }
 0x83a   : > { %1723 = vmatmul.mubr.msk.bf16.vlgmr.msra.gmra.mxu1 %vm644_vm2, %v1142_v35 }
 0x83b   : > { %v1239_v37 = vpop.f32.mrf.mxu0  ;;  %1734 = vmatprep.mubr.msk.bf16.mxu1 %vm2167_vm1, %v2166_v0 }
 0x83c   : > { %v1246_v38 = vmul.f32 0.35355338, %v1239_v37 }
 0x83d   : > { %v1730_v39 = vpop.f32.mrf.mxu0 }
 0x83e   : > { %v1248_v40 = vadd.f32 %v2456_v21, %v1246_v38 }
 0x83f   : > { %v1242_v41 = vpop.f32.mrf.mxu0 }
 0x840   : > { %v1247_v43 = vmul.f32 0.35355338, %v1242_v41  ;;  %v1250_v44 = vsel %vm644_vm2, %v1248_v40, -inf }
 0x841   : > { %1251 = vmax.xlane.f32.xlu1 %v1250_v44  ;;  %v1731_v45 = vpop.f32.mrf.mxu0 }
 0x842   : > { %v1249_v46 = vadd.f32 %v2456_v21, %v1247_v43  ;;  %v1140_v21 = vld [vmem:[#allocation2] sm:$0xff] }
 0x844   : > { %v1253_v47 = vsel %vm644_vm2, %v1249_v46, -inf }
 0x845   : > { %1254 = vmax.xlane.f32.xlu0 %v1253_v47 }
 0x8ca   : > { %v1252_v48 = vpop.xlane.xlu1 %1251 }
 0x8cb   : > { %v1256_v49 = vsub.f32 %v1248_v40, %v1252_v48 }
 0x8cd   : > { %v1258_v50 = vmul.f32 1.442695, %v1256_v49 }
 0x8ce   : > { %v1255_v51 = vpop.xlane.xlu0 %1254 }
 0x8cf   : > { %1892 = vpow2.f32 %v1258_v50  ;;  %v1257_v0 = vsub.f32 %v1249_v46, %v1255_v51 }
 0x8d1   : > { %v1260_v52 = vmul.f32 1.442695, %v1257_v0 }
 0x8d3   : > { %1894 = vpow2.f32 %v1260_v52 }
 0x8dc   : > { %v1893_v53 = vpop.eup %1892 }
 0x8dd   : > { %v1262_v54 = vsel %vm644_vm2, %v1893_v53, 0.0 }
 0x8de   : > { %1263 = vadd.xlane.f32.xlu0 %v1262_v54 }
 0x8e0   : > { %v1895_v55 = vpop.eup %1894 }
 0x8e1   : > { %v1265_v56 = vsel %vm644_vm2, %v1895_v55, 0.0 }
 0x8e2   : > { %1266 = vadd.xlane.f32.xlu1 %v1265_v56 }
 0x8f4   : > { %1273 = vrot.lane.b32.xlu0 %v2466_v42, %s2170_s23 }
 0x8fa   : > { %v1184_v57 = vpop.f32.mrf.mxu1 }
 0x8fb   : > { %v1191_v58 = vadd.f32 %v1184_v57, %v1140_v21 }
 0x8fc   : > { %v1724_v59 = vpop.f32.mrf.mxu1 }
 0x8fd   : > { %1193 = vst.msk [vmem:[#allocation2] sm:$0xff] %vm479_vm0, %v1191_v58 }
 0x8fe   : > { %v1187_v61 = vpop.f32.mrf.mxu1 }
 0x8ff   : > { %v1192_v62 = vadd.f32 %v1187_v61, %v1141_v60 }
 0x900   : > { %v1725_v63 = vpop.f32.mrf.mxu1 }
 0x901   : > { %1194 = vst.msk [vmem:[#allocation2 + $0x8] sm:$0xff] %vm479_vm0, %v1192_v62 }
 0x904   : > { %v1322_v16 = vld [vmem:[#allocation2] sm:$0xff] }
 0x908   : > { %v1323_v22 = vld [vmem:[#allocation2 + $0x8] sm:$0xff] }
 0x967   : > { %v1264_v1 = vpop.xlane.xlu0 %1263 }
 0x968   : > { %1896 = vrcp.f32 %v1264_v1 }
 0x96b   : > { %v1267_v2 = vpop.xlane.xlu1 %1266  ;;  %v1274_v3 = vpop.permute.xlu0 %1273 }
 0x96c   : > { %1898 = vrcp.f32 %v1267_v2  ;;  %v1279_v4 = vsel %vm728_vm3, %v1274_v3, 0 }
 0x96d   : > { %1733 = vmatpush3.bf16.msra.mxu1 %v1279_v4 }
 0x975   : > { %v1897_v42 = vpop.eup %1896 }
 0x976   : > { %v1270_v7 = vmul.f32 %v1897_v42, %v1893_v53 }
 0x979   : > { %v1899_v5 = vpop.eup %1898 }
 0x97a   : > { %v1271_v6 = vmul.f32 %v1899_v5, %v1895_v55 }
 0x97c   : > { %v1272_v8 = vpack.c.bf16 %v1271_v6, %v1270_v7 }
 0x97e   : > { %1735 = vmatmul.mubr.msk.bf16.vlgmr.msra.gmra.mxu1 %vm644_vm2, %v1272_v8 }
 0xa3e   : > { %v1315_v11 = vpop.f32.mrf.mxu1 }
 0xa40   : > { %v1736_v12 = vpop.f32.mrf.mxu1 }
 0xa42   : > { %v1318_v13 = vpop.f32.mrf.mxu1 }
 0xa43   : > { %v1324_v14 = vpack.c.bf16 %v1318_v13, %v1315_v11 }
 0xa44   : > { %v1737_v15 = vpop.f32.mrf.mxu1 }
 0xa45   : > { %1741 = vmatmul.mubr.msk.bf16.vlgmr.msra.gmra.mxu0 %vm644_vm2, %v1324_v14 }
 0xb05   : > { %v1366_v18 = vpop.f32.mrf.mxu0 }
 0xb06   : > { %v1373_v19 = vadd.f32 %v1366_v18, %v1322_v16 }
 0xb07   : > { %v1742_v20 = vpop.f32.mrf.mxu0 }
 0xb08   : > { %1375 = vst.msk [vmem:[#allocation2] sm:$0xff] %vm479_vm0, %v1373_v19 }
 0xb09   : > { %v1369_v23 = vpop.f32.mrf.mxu0 }
 0xb0a   : > { %v1374_v24 = vadd.f32 %v1369_v23, %v1323_v22 }
 0xb0b   : > { %v1743_v25 = vpop.f32.mrf.mxu0 }
 0xb0c   : > { %1376 = vst.msk [vmem:[#allocation2 + $0x8] sm:$0xff] %vm479_vm0, %v1374_v24 }
 0xb0f   : > { %v1377_v26 = vld [vmem:[#allocation2] sm:$0xff] }
 0xb10   : > { %v1386_v27 = vadd.f32 %v1607_v9, %v1377_v26 }
 0xb12   : > { %1388 = vst.msk [vmem:[%s447_s18] sm:$0xff] %vm479_vm0, %v1386_v27 }
 0xb13   : > { %v1378_v28 = vld [vmem:[#allocation2 + $0x8] sm:$0xff] }
 0xb14   : > { %v1387_v29 = vadd.f32 %v1607_v9, %v1378_v28 }
 0xb16   : > { %1389 = vst.msk [vmem:[%s447_s18 + $0x8] sm:$0xff] %vm479_vm0, %v1387_v29 }
 0xb17   : > { %2073 = shalt.err (!%p2070_p2)
}
 0xb18   : > { %s2074_s15 = scalar_lea.hbm %s2569_s6, 256  ;;  %s2078_s24 = scalar_lea.hbm %s2628_s8, 512 }
 0xb19   : > { %p2075_p3 = scmp.ne.s32.totalorder %s2569_s6, %s2074_s15  ;;  %p2079_p5 = scmp.lt.s32.totalorder %s2569_s6, %s2628_s8 }
 0xb1a   : > { %p2080_p4 = scmp.lt.s32.totalorder %s2078_s24, %s2074_s15 }
 0xb1b   : > { %p2076_p13 = pnand %p2075_p3, %p2338_p0 }
 0xb1c   : > { %p2081_p10 = por %p2080_p4, %p2079_p5 }
 0xb1d   : > { %p2077_p11 = pneg %p2076_p13 }
 0xb1f   : > { %p2082_p12 = pnand %p2081_p10, %p2077_p11 }
 0xb21   : > { %2085 = shalt.err (!%p2082_p12)
}
 0xb22   : > { %s2172_s16 = smov 128   ;;  %s2173_s23 = smov 8  }
 0xb23   : > { %1764 = dma.vmem_to_hbm [thread:$0]  (%p2338_p0), %s2571_s12, 256, %s2569_s6, %s1391_s10, %s2172_s16, %s2172_s16, %s2173_s23  }
 0xb24 PF: > { %s2667_s19 = sld [smem:[#allocation22_spill]]  ;;  %s1421_s20 = sand.u32 1, %s2136_s27  }
 0xb25   : > { %s1422_s25 = scalar_lea.sflag [#allocation5], %s1421_s20 }
 0xb2a   : > { %p2668_p7 = scmp.ge.s32.totalorder %s2667_s19, 2 }
 0xb2c   : > { %p1787_p1 = pnand %p2668_p7, %p2264_p6 }
 0xb2e   : > { %p1788_p9 = pneg %p1787_p1 }
 0xb30   : > { %2131 = dma.done.wait (%p1788_p9), %s1422_s25, 256  }
 0xb31   : > { %2133 = vsyncadd (%p1788_p9), %s1422_s25, 4294967040  ;;  %s29_s10 = sadd.s32 1, %s2667_s19   ;;  %s2669_s18 = sld [smem:[#allocation21_spill]] }
 0xb32   : > { %p26_p8 = scmp.ge.s32.totalorder %s29_s10, 4   ;;  %s2670_s29 = sld [smem:[#allocation25_spill]] }
 0xb33   : > { %s2671_s17 = sld [smem:[#allocation24_spill]]  ;;  %s2672_s27 = smov %s2140_s28 }
 0xb34   : > { %s2674_s30 = smov %s2152_s9 }
 0xb35   :  { %28 = sbr.rel (!%p26_p8) target bundleno = 16 (0x10), region = 129 }
 0xb37   : > { %s2673_s28 = smov %s2669_s18 }
 0xb39   : > { %s2675_s9 = smov %s2671_s17 }
 0xb3a   :  { %1427 = vsyncpa [#allocation4], 1 }
 0xb3b   :  { %1429 = vsyncpa [#allocation4 + $0x1], 1 }
 0xb3c   :  { %1430 = vsyncpa [#allocation7], 1 }
 0xb3d   :  { %1432 = vsyncpa [#allocation7 + $0x1], 1 }
 0xb3e   :  { %1433 = vsyncpa [#allocation10], 1 }
 0xb3f   :  { %1434 = vsyncpa [#allocation13], 1 }
 0xb40   :  { %1435 = vsyncpa [#allocation5], 1 }
 0xb41   :  { %1437 = vsyncpa [#allocation5 + $0x1], 1 }

</bundles_post_ra>
